<compile_context>
chip_gen: v6e
topology: v6e:2x2x1
jax: 0.10.0
libtpu: 0.0.40
codegen_flags: <defaults>
</compile_context>

<pallas_src>
import jax
import jax.numpy as jnp
from jax.experimental import pallas as pl
from jax.experimental.pallas import tpu as pltpu

N_INPUT = 13
N_HIDDEN = 32            # n_hidden_neurons
N_HIDDEN2 = N_HIDDEN // 2
N_OUT = 3
DEFAULT_TILE_B = 2048


def _round_up(x, m):
    return ((x + m - 1) // m) * m


def winenet_kernel(x_ref, w1_ref, b1_ref, w2_ref, b2_ref, w3_ref, b3_ref, out_ref):
    # fc1 + ReLU   (x: [tile_b, 13] @ w1: [13, 32])
    h1 = jnp.dot(x_ref[...], w1_ref[...], preferred_element_type=jnp.float32)
    h1 = jnp.maximum(h1 + b1_ref[...], 0.0)
    # fc2 + ReLU   ([tile_b, 32] @ [32, 16])
    h2 = jnp.dot(h1, w2_ref[...], preferred_element_type=jnp.float32)
    h2 = jnp.maximum(h2 + b2_ref[...], 0.0)
    # fc3 logits ([tile_b, 16] @ [16, 3]) — reference forward() returns pre-softmax.
    h3 = jnp.dot(h2, w3_ref[...], preferred_element_type=jnp.float32)
    out_ref[...] = (h3 + b3_ref[...]).astype(out_ref.dtype)


def winenet_forward(x, params, tile_b=DEFAULT_TILE_B):
    """x: [B, N_INPUT] float32; params: dict of weights/biases. Returns [B, N_OUT] logits."""
    B = x.shape[0]
    w1, b1, w2, b2, w3, b3 = (
        params["w1"], params["b1"], params["w2"],
        params["b2"], params["w3"], params["b3"],
    )

    # Batch tile: multiple of 8 sublanes, shrink to the batch for small B.
    # For B > tile_b the grid has >=2 steps, which also lets the "parallel"
    # batch axis shard across both TensorCores on v7x.
    tile_b = max(8, min(_round_up(tile_b, 8), _round_up(B, 8)))
    grid = (pl.cdiv(B, tile_b),)          # Pallas masks the partial last block.

    resident = lambda i: (0, 0)           # weights/biases stay put across grid steps

    out = pl.pallas_call(
        winenet_kernel,
        out_shape=jax.ShapeDtypeStruct((B, N_OUT), jnp.float32),
        grid_spec=pltpu.PrefetchScalarGridSpec(
            num_scalar_prefetch=0,
            grid=grid,
            in_specs=[
                pl.BlockSpec((tile_b, N_INPUT), lambda i: (i, 0)),   # x: batch-tiled
                pl.BlockSpec((N_INPUT, N_HIDDEN), resident),         # w1
                pl.BlockSpec((1, N_HIDDEN), resident),               # b1
                pl.BlockSpec((N_HIDDEN, N_HIDDEN2), resident),       # w2
                pl.BlockSpec((1, N_HIDDEN2), resident),              # b2
                pl.BlockSpec((N_HIDDEN2, N_OUT), resident),          # w3
                pl.BlockSpec((1, N_OUT), resident),                  # b3
            ],
            out_specs=pl.BlockSpec((tile_b, N_OUT), lambda i: (i, 0)),
        ),
        compiler_params=pltpu.CompilerParams(
            dimension_semantics=("parallel",),
            vmem_limit_bytes=32 * 1024 * 1024,
        ),
    )(x, w1, b1, w2, b2, w3, b3)

    return out


def winenet_inference(x, params):
    """Matches WineNet.inference(): forward + softmax over classes."""
    return jax.nn.softmax(winenet_forward(x, params), axis=1)


def init_params(key):
    """Deterministic init mimicking PyTorch Linear's U(-1/sqrt(fan_in), +)."""
    def linear(k, fan_in, fan_out):
        kw, kb = jax.random.split(k)
        bound = 1.0 / jnp.sqrt(jnp.float32(fan_in))
        # stored as [in, out] for x @ W (transposed from torch's [out, in])
        w = jax.random.uniform(kw, (fan_in, fan_out), jnp.float32, -bound, bound)
        b = jax.random.uniform(kb, (1, fan_out), jnp.float32, -bound, bound)
        return w, b

    k1, k2, k3 = jax.random.split(key, 3)
    w1, b1 = linear(k1, N_INPUT, N_HIDDEN)
    w2, b2 = linear(k2, N_HIDDEN, N_HIDDEN2)
    w3, b3 = linear(k3, N_HIDDEN2, N_OUT)
    return dict(w1=w1, b1=b1, w2=w2, b2=b2, w3=w3, b3=b3)


def reference_forward(x, p):
    h1 = jnp.maximum(x @ p["w1"] + p["b1"], 0.0)
    h2 = jnp.maximum(h1 @ p["w2"] + p["b2"], 0.0)
    return h2 @ p["w3"] + p["b3"]


if __name__ == "__main__":
    key = jax.random.PRNGKey(0)
    kp, kx1, kx2 = jax.random.split(key, 3)
    params = init_params(kp)

    # Small case: single tile, full batch fits one block.
    x_small = jax.random.normal(kx1, (8, N_INPUT), jnp.float32)
    out_small = jax.block_until_ready(winenet_forward(x_small, params))
    ref_small = reference_forward(x_small, params)
    assert out_small.shape == (8, N_OUT)
    assert jnp.allclose(out_small, ref_small, atol=1e-5, rtol=1e-5)

    # Ragged multi-tile case with a small tile override: exercises the grid +
    # Pallas partial-last-block path (no host-side padding or slicing copies).
    x_rag = jax.random.normal(kx2, (150, N_INPUT), jnp.float32)
    out_rag = jax.block_until_ready(winenet_forward(x_rag, params, tile_b=64))
    ref_rag = reference_forward(x_rag, params)
    assert out_rag.shape == (150, N_OUT)
    assert jnp.allclose(out_rag, ref_rag, atol=1e-5, rtol=1e-5)

    # inference() path (softmax applied outside the kernel).
    probs = jax.block_until_ready(winenet_inference(x_small, params))
    assert jnp.allclose(jnp.sum(probs, axis=1), 1.0, atol=1e-5)

    print("KERNEL_OK")
</pallas_src>

<mosaic_0001>
module attributes {stable_mosaic.version = 11 : i64} {
  func.func @winenet_kernel(%arg0: i32, %arg1: memref<8x13xf32, #tpu.memory_space<vmem>>, %arg2: memref<13x32xf32, #tpu.memory_space<vmem>>, %arg3: memref<1x32xf32, #tpu.memory_space<vmem>>, %arg4: memref<32x16xf32, #tpu.memory_space<vmem>>, %arg5: memref<1x16xf32, #tpu.memory_space<vmem>>, %arg6: memref<16x3xf32, #tpu.memory_space<vmem>>, %arg7: memref<1x3xf32, #tpu.memory_space<vmem>>, %arg8: memref<8x3xf32, #tpu.memory_space<vmem>>) attributes {dimension_semantics = [#tpu.dimension_semantics<parallel>], iteration_bounds = array<i64: 1>, scalar_prefetch = 0 : i64, scratch_operands = 0 : i64, tpu.core_type = #tpu.core_type<tc>, window_params = [{transform_indices = @transform_0, window_bounds = array<i64: 8, 13>}, {pipeline_mode = #tpu.pipeline_mode<synchronous>, transform_indices = @transform_1, window_bounds = array<i64: 13, 32>}, {pipeline_mode = #tpu.pipeline_mode<synchronous>, transform_indices = @transform_2, window_bounds = array<i64: 1, 32>}, {pipeline_mode = #tpu.pipeline_mode<synchronous>, transform_indices = @transform_3, window_bounds = array<i64: 32, 16>}, {pipeline_mode = #tpu.pipeline_mode<synchronous>, transform_indices = @transform_4, window_bounds = array<i64: 1, 16>}, {pipeline_mode = #tpu.pipeline_mode<synchronous>, transform_indices = @transform_5, window_bounds = array<i64: 16, 3>}, {pipeline_mode = #tpu.pipeline_mode<synchronous>, transform_indices = @transform_6, window_bounds = array<i64: 1, 3>}, {transform_indices = @transform_7, window_bounds = array<i64: 8, 3>}]} {
    %c0 = arith.constant 0 : index
    %c0_0 = arith.constant 0 : index
    %0 = vector.load %arg1[%c0, %c0_0] : memref<8x13xf32, #tpu.memory_space<vmem>>, vector<8x13xf32>
    %c0_1 = arith.constant 0 : index
    %c0_2 = arith.constant 0 : index
    %1 = vector.load %arg2[%c0_1, %c0_2] : memref<13x32xf32, #tpu.memory_space<vmem>>, vector<13x32xf32>
    %cst = arith.constant dense<0.000000e+00> : vector<8x32xf32>
    %2 = tpu.matmul %0, %1, %cst {dimension_numbers = #tpu.dot_dimension_numbers<[1], [0], [0], [1], [0, 0, 1, 1], [], []>} : vector<8x13xf32>, vector<13x32xf32>, vector<8x32xf32> -> vector<8x32xf32>
    %c0_3 = arith.constant 0 : index
    %c0_4 = arith.constant 0 : index
    %3 = vector.load %arg3[%c0_3, %c0_4] : memref<1x32xf32, #tpu.memory_space<vmem>>, vector<1x32xf32>
    %4 = vector.broadcast %3 : vector<1x32xf32> to vector<8x32xf32>
    %5 = arith.addf %2, %4 : vector<8x32xf32>
    %cst_5 = arith.constant 0.000000e+00 : f32
    %6 = vector.broadcast %cst_5 : f32 to vector<8x32xf32>
    %7 = arith.maximumf %5, %6 : vector<8x32xf32>
    %c0_6 = arith.constant 0 : index
    %c0_7 = arith.constant 0 : index
    %8 = vector.load %arg4[%c0_6, %c0_7] : memref<32x16xf32, #tpu.memory_space<vmem>>, vector<32x16xf32>
    %cst_8 = arith.constant dense<0.000000e+00> : vector<8x16xf32>
    %9 = tpu.matmul %7, %8, %cst_8 {dimension_numbers = #tpu.dot_dimension_numbers<[1], [0], [0], [1], [0, 0, 1, 1], [], []>} : vector<8x32xf32>, vector<32x16xf32>, vector<8x16xf32> -> vector<8x16xf32>
    %c0_9 = arith.constant 0 : index
    %c0_10 = arith.constant 0 : index
    %10 = vector.load %arg5[%c0_9, %c0_10] : memref<1x16xf32, #tpu.memory_space<vmem>>, vector<1x16xf32>
    %11 = vector.broadcast %10 : vector<1x16xf32> to vector<8x16xf32>
    %12 = arith.addf %9, %11 : vector<8x16xf32>
    %cst_11 = arith.constant 0.000000e+00 : f32
    %13 = vector.broadcast %cst_11 : f32 to vector<8x16xf32>
    %14 = arith.maximumf %12, %13 : vector<8x16xf32>
    %c0_12 = arith.constant 0 : index
    %c0_13 = arith.constant 0 : index
    %15 = vector.load %arg6[%c0_12, %c0_13] : memref<16x3xf32, #tpu.memory_space<vmem>>, vector<16x3xf32>
    %cst_14 = arith.constant dense<0.000000e+00> : vector<8x3xf32>
    %16 = tpu.matmul %14, %15, %cst_14 {dimension_numbers = #tpu.dot_dimension_numbers<[1], [0], [0], [1], [0, 0, 1, 1], [], []>} : vector<8x16xf32>, vector<16x3xf32>, vector<8x3xf32> -> vector<8x3xf32>
    %c0_15 = arith.constant 0 : index
    %c0_16 = arith.constant 0 : index
    %17 = vector.load %arg7[%c0_15, %c0_16] : memref<1x3xf32, #tpu.memory_space<vmem>>, vector<1x3xf32>
    %18 = vector.broadcast %17 : vector<1x3xf32> to vector<8x3xf32>
    %19 = arith.addf %16, %18 : vector<8x3xf32>
    %c0_17 = arith.constant 0 : index
    %c0_18 = arith.constant 0 : index
    %20 = vector.load %arg8[%c0_17, %c0_18] : memref<8x3xf32, #tpu.memory_space<vmem>>, vector<8x3xf32>
    tpu.vector_store %arg8[%c0_17, %c0_18], %19 {strides = array<i32>} : memref<8x3xf32, #tpu.memory_space<vmem>>, vector<8x3xf32>,
    return
  }
  func.func @transform_0(%arg0: i32) -> (i32, i32) {
    %c0_i32 = arith.constant 0 : i32
    %c0_i32_0 = arith.constant 0 : i32
    return %arg0, %c0_i32 : i32, i32
  }
  func.func @transform_1(%arg0: i32) -> (i32, i32) {
    %c0_i32 = arith.constant 0 : i32
    %c0_i32_0 = arith.constant 0 : i32
    %c0_i32_1 = arith.constant 0 : i32
    return %c0_i32, %c0_i32_0 : i32, i32
  }
  func.func @transform_2(%arg0: i32) -> (i32, i32) {
    %c0_i32 = arith.constant 0 : i32
    %c0_i32_0 = arith.constant 0 : i32
    %c0_i32_1 = arith.constant 0 : i32
    return %c0_i32, %c0_i32_0 : i32, i32
  }
  func.func @transform_3(%arg0: i32) -> (i32, i32) {
    %c0_i32 = arith.constant 0 : i32
    %c0_i32_0 = arith.constant 0 : i32
    %c0_i32_1 = arith.constant 0 : i32
    return %c0_i32, %c0_i32_0 : i32, i32
  }
  func.func @transform_4(%arg0: i32) -> (i32, i32) {
    %c0_i32 = arith.constant 0 : i32
    %c0_i32_0 = arith.constant 0 : i32
    %c0_i32_1 = arith.constant 0 : i32
    return %c0_i32, %c0_i32_0 : i32, i32
  }
  func.func @transform_5(%arg0: i32) -> (i32, i32) {
    %c0_i32 = arith.constant 0 : i32
    %c0_i32_0 = arith.constant 0 : i32
    %c0_i32_1 = arith.constant 0 : i32
    return %c0_i32, %c0_i32_0 : i32, i32
  }
  func.func @transform_6(%arg0: i32) -> (i32, i32) {
    %c0_i32 = arith.constant 0 : i32
    %c0_i32_0 = arith.constant 0 : i32
    %c0_i32_1 = arith.constant 0 : i32
    return %c0_i32, %c0_i32_0 : i32, i32
  }
  func.func @transform_7(%arg0: i32) -> (i32, i32) {
    %c0_i32 = arith.constant 0 : i32
    %c0_i32_0 = arith.constant 0 : i32
    return %arg0, %c0_i32 : i32, i32
  }
}

</mosaic_0001>

<bundles_post_ra>
// kernel: tpu_custom_call.1
= control target key start
LH: loop header
LB: loop body
LE: loop exit
PB: predicated region body
PF: predicated region fallthrough
CT: control target
= control target key end

     0   :  { %vm40_vm0 = vcmask 1044480   ;;  %v335_v0 = vmov 0.0   ;;  %vm336_vm1 = vmmov 0   ;;  %vm36_vm2 = vcmask 105472   ;;  %s416_s1 = inlined_call_operand.vmem [shape: f32[13,32], index: 1, kind: input, shape index: {}]   ;;  %s417_s0 = inlined_call_operand.vmem [shape: f32[8,13], index: 0, kind: input, shape index: {}]   ;;  %s418_s3 = inlined_call_operand.vmem [shape: f32[32,16], index: 3, kind: input, shape index: {}]   ;;  %s419_s2 = inlined_call_operand.vmem [shape: f32[1,32], index: 2, kind: input, shape index: {}]   ;;  %s420_s5 = inlined_call_operand.vmem [shape: f32[16,3], index: 5, kind: input, shape index: {}]   ;;  %s421_s4 = inlined_call_operand.vmem [shape: f32[1,16], index: 4, kind: input, shape index: {}]   ;;  %s422_s6 = inlined_call_operand.vmem [shape: f32[1,3], index: 6, kind: input, shape index: {}]   ;;  %s423_s7 = inlined_call_operand.vmem [shape: f32[8,3], index: 7, kind: output, shape index: {}]  }
   0x1   :  { %308 = vmatprep.subr.mxu0 %v335_v0  ;;  %v28_v1 = vld [vmem:[%s416_s1 + $0x8] sm:$0x1f]  ;;  %v27_v2 = vld [vmem:[%s416_s1] sm:$0xff]  ;;  %312 = vmatprep.mubr.msk.f32.mxu0 %vm336_vm1, %v335_v0  ;;  %v118_v4 = vld [vmem:[%s418_s3 + $0x18] sm:$0xff]  ;;  %vm126_vm3 = vcmask 261120   ;;  %vm210_vm4 = vcmask 130048  }
   0x2   :  { %309 = vmatpush3.msk.msra.mxu0 %vm40_vm0, %v28_v1  ;;  %v26_v3 = vld [vmem:[%s417_s0] sm:$0xff]  ;;  %315 = vmatprep.subr.mxu1 %v335_v0  ;;  %v117_v5 = vld [vmem:[%s418_s3 + $0x10] sm:$0xff]  ;;  %v116_v6 = vld [vmem:[%s418_s3 + $0x8] sm:$0xff]  ;;  %vm284_vm5 = vcmask 23552  }
   0x3   :  { %310 = vmatprep.subr.mxu0 %v335_v0  ;;  %316 = vmatpush3.msra.mxu1 %v118_v4  ;;  %v115_v7 = vld [vmem:[%s418_s3] sm:$0xff]  ;;  %v202_v13 = vld [vmem:[%s420_s5 + $0x8] sm:$0xff] }
   0x4   :  { %311 = vmatpush3.msra.mxu0 %v27_v2  ;;  %317 = vmatprep.subr.mxu1 %v335_v0  ;;  %v290_v8 = vld [vmem:[%s419_s2] ss:$0 sm:$0xff] }
   0x5   :  { %313 = vmatmul.mubr.msk.f32.vlgmr.msra.gmra.mxu0 %vm36_vm2, %v26_v3  ;;  %323 = vmatprep.mubr.msk.f32.mxu1 %vm336_vm1, %v335_v0  ;;  %v201_v14 = vld [vmem:[%s420_s5] sm:$0xff] }
   0x6   :  { %326 = vmatprep.subr.mxu0 %v335_v0  ;;  %330 = vmatprep.mubr.msk.f32.mxu0 %vm336_vm1, %v335_v0  ;;  %v293_v15 = vld [vmem:[%s421_s4] ss:$0 sm:$0xff] }
   0x7   :  { %318 = vmatpush3.msra.mxu1 %v117_v5  ;;  %327 = vmatpush3.msra.mxu0 %v202_v13  ;;  %v295_v20 = vld [vmem:[%s422_s6] ss:$0 sm:$0xff] }
   0x8   :  { %319 = vmatprep.subr.mxu1 %v335_v0  ;;  %328 = vmatprep.subr.mxu0 %v335_v0 }
   0x9   :  { %320 = vmatpush3.msra.mxu1 %v116_v6  ;;  %329 = vmatpush3.msra.mxu0 %v201_v14 }
   0xa   :  { %321 = vmatprep.subr.mxu1 %v335_v0 }
   0xb   :  { %322 = vmatpush3.msra.mxu1 %v115_v7 }
  0xc5   :  { %v110_v9 = vpop.f32.mrf.mxu0 }
  0xc6   :  { %v111_v10 = vadd.f32 %v290_v8, %v110_v9 }
  0xc7   :  { %v314_v11 = vpop.f32.mrf.mxu0 }
  0xc8   :  { %v114_v12 = vmax.f32 %v111_v10, 0.0 }
  0xca   :  { %324 = vmatmul.mubr.msk.f32.vlgmr.msra.gmra.mxu1 %vm126_vm3, %v114_v12 }
 0x18a   :  { %v196_v16 = vpop.f32.mrf.mxu1 }
 0x18b   :  { %v197_v17 = vadd.f32 %v293_v15, %v196_v16 }
 0x18c   :  { %v325_v18 = vpop.f32.mrf.mxu1 }
 0x18d   :  { %v200_v19 = vmax.f32 %v197_v17, 0.0 }
 0x18f   :  { %331 = vmatmul.mubr.msk.f32.vlgmr.msra.gmra.mxu0 %vm210_vm4, %v200_v19 }
 0x24f   :  { %v280_v21 = vpop.f32.mrf.mxu0 }
 0x250   :  { %v281_v22 = vadd.f32 %v295_v20, %v280_v21 }
 0x251   :  { %v332_v23 = vpop.f32.mrf.mxu0 }
 0x252   :  { %285 = vst.msk [vmem:[%s423_s7] sm:$0xff] %vm284_vm5, %v281_v22 }

</bundles_post_ra>
